<compile_context>
chip_gen: v5e
topology: v5e:2x2
jax: 0.10.0
libtpu: 0.0.40
codegen_flags: <defaults>
</compile_context>

<pallas_src>
import jax
import jax.numpy as jnp
from jax.experimental import pallas as pl
from jax.experimental.pallas import tpu as pltpu


def _gelu(x):
    # TODO(synk): torch.nn.GELU() defaults to the exact erf form; we use the tanh
    # approximation (EUP-friendly, guaranteed Mosaic lowering). Max |diff| ~1e-3.
    return jax.nn.gelu(x, approximate=True)


# --------------------------------------------------------------------------- #
# Kernel: one batch element per grid step, everything in VMEM, no scratch.
# --------------------------------------------------------------------------- #
def _double_conv_kernel(xp_ref, a1_ref, a2_ref, as_ref, sbo_ref, sbi_ref, o_ref):
    # xp_ref : (1, H+2, W*Cin)    one batch element, row-padded input slab
    # a1_ref : (3*W*Cin,  W*Cout) banded conv1 weights, rows [dy*WCin:(dy+1)*WCin]
    # a2_ref : (3*W*Cout, W*Cout) banded conv2 weights
    # as_ref : (W*Cin,    W*Cout) block-diagonal 1x1 shortcut conv weights
    # sbo_ref: (5, W*Cout) rows = [s1, b1, s2, b2, shortcut_bias] (BN+bias folded)
    # sbi_ref: (2, W*Cin)  rows = [s_in, b_in]                    (BN folded)
    # o_ref  : (1, H, W*Cout)
    H = o_ref.shape[1]
    WCin = xp_ref.shape[2]
    WCout = o_ref.shape[2]
    mxu_dtype = a1_ref.dtype

    # Folded BN scale/bias rows — loaded once per block, broadcast over (H, WC).
    s1, b1 = sbo_ref[0:1, :], sbo_ref[1:2, :]
    s2, b2 = sbo_ref[2:3, :], sbo_ref[3:4, :]
    bsc = sbo_ref[4:5, :]
    si, bi = sbi_ref[0:1, :], sbi_ref[1:2, :]

    def dotf(a, b):
        return jnp.dot(a, b, preferred_element_type=jnp.float32)

    # ---- conv1 (3x3, pad=1) + BN1 (folded) + GELU ------------------------- #
    # Horizontal taps + horizontal zero-pad live in the banded weights; the 3
    # vertical taps are 3 row-shifted ref reads of the padded slab, with all H
    # rows folded into the MXU M dimension.
    acc1 = (dotf(xp_ref[0, 0:H, :].astype(mxu_dtype), a1_ref[0 * WCin:1 * WCin, :])
            + dotf(xp_ref[0, 1:1 + H, :].astype(mxu_dtype), a1_ref[1 * WCin:2 * WCin, :])
            + dotf(xp_ref[0, 2:2 + H, :].astype(mxu_dtype), a1_ref[2 * WCin:3 * WCin, :]))
    h1 = _gelu(acc1 * s1 + b1)                                   # (H, WCout) f32

    # ---- conv2 (3x3, pad=1) + BN2 (folded) + GELU ------------------------- #
    # No VMEM scratch round-trip: one matmul per vertical tap on h1, then the
    # vertical shift + zero boundary are applied to the results with XLU
    # sublane rolls and VPU boundary masks.
    h1m = h1.astype(mxu_dtype)
    q0 = dotf(h1m, a2_ref[0 * WCout:1 * WCout, :])
    q1 = dotf(h1m, a2_ref[1 * WCout:2 * WCout, :])
    q2 = dotf(h1m, a2_ref[2 * WCout:3 * WCout, :])
    rows = jax.lax.broadcasted_iota(jnp.int32, (H, WCout), 0)
    acc2 = (q1
            + jnp.where(rows >= 1, pltpu.roll(q0, 1, axis=0), 0.0)          # q0[r-1]
            + jnp.where(rows <= H - 2, pltpu.roll(q2, H - 1, axis=0), 0.0))  # q2[r+1]
    main = _gelu(acc2 * s2 + b2)

    # ---- shortcut: BN(x) -> GELU -> 1x1 conv (+ bias) ---------------------- #
    xin = xp_ref[0, 1:1 + H, :].astype(jnp.float32)
    res = _gelu(xin * si + bi)
    res = dotf(res.astype(mxu_dtype), as_ref[...]) + bsc

    o_ref[0] = (main + res).astype(o_ref.dtype)


# --------------------------------------------------------------------------- #
# Wrapper-side weight preparation (pure XLA, runs once per call / under jit).
# --------------------------------------------------------------------------- #
def _banded_conv_weights(w, W):
    """w: (Cout, Cin, 3, 3) -> (3, W*Cin, W*Cout).

    For each vertical tap dy, build a block-tri-banded matrix that applies the
    three horizontal taps (with zero padding at the row ends) as one matmul:
        A[dy][w_in*Cin + i, w_out*Cout + o] = w[o, i, dy, w_in - w_out + 1]
    for |w_in - w_out| <= 1, else 0.
    """
    Cout, Cin = w.shape[0], w.shape[1]
    r = jnp.arange(W)
    mats = []
    for dy in range(3):
        a = jnp.zeros((W, Cin, W, Cout), w.dtype)
        for dx in range(3):
            shift = (r[:, None] == (r[None, :] + dx - 1)).astype(w.dtype)
            a = a + jnp.einsum('uv,oi->uivo', shift, w[:, :, dy, dx])
        mats.append(a.reshape(W * Cin, W * Cout))
    return jnp.stack(mats, axis=0)


def _blockdiag_1x1(w, W):
    """w: (Cout, Cin, 1, 1) -> block-diagonal (W*Cin, W*Cout) 1x1-conv matrix."""
    eye = jnp.eye(W, dtype=w.dtype)
    return jnp.einsum('uv,oi->uivo', eye, w[:, :, 0, 0]).reshape(
        W * w.shape[1], W * w.shape[0])


def _fold_bn(gamma, beta, mean, var, conv_bias=None, eps=1e-5):
    """Eval-mode BatchNorm (+ preceding conv bias) folded to y = x*scale + bias."""
    scale = gamma / jnp.sqrt(var + eps)
    bias = beta - mean * scale
    if conv_bias is not None:
        bias = bias + conv_bias * scale
    return scale, bias


def double_conv3x3(x, p, *, mxu_dtype=jnp.bfloat16):
    """x: (B, Cin, H, W) NCHW float32 -> (B, Cout, H, W). Eval-mode BN.

    mxu_dtype: dtype of MXU operands (weights + matmul LHS). bf16 roughly
    doubles MXU issue rate on v6e/v7x and halves weight VMEM; elementwise
    BN/GELU math always stays float32, accumulation is always float32.
    """
    B, Cin, H, W = x.shape
    Cout = p['w1'].shape[0]
    WCin, WCout = W * Cin, W * Cout
    Hp2 = H + 2

    # NCHW -> channel-last row slabs (B, H, W*Cin), zero-pad one row top/bottom.
    x_rows = jnp.transpose(x, (0, 2, 3, 1)).reshape(B, H, WCin)
    xp = jnp.pad(x_rows, ((0, 0), (1, 1), (0, 0)))

    # Conv weights in "banded matmul" form, stacked as 2-D slabs (one row-block
    # per vertical tap); BN (+ conv bias) folded to tiled scale/bias rows.
    a1 = _banded_conv_weights(p['w1'], W).reshape(3 * WCin, WCout).astype(mxu_dtype)
    a2 = _banded_conv_weights(p['w2'], W).reshape(3 * WCout, WCout).astype(mxu_dtype)
    a_s = _blockdiag_1x1(p['ws'], W).astype(mxu_dtype)

    s1, b1 = _fold_bn(p['bn1_g'], p['bn1_b'], p['bn1_m'], p['bn1_v'], p['b1'])
    s2, b2 = _fold_bn(p['bn2_g'], p['bn2_b'], p['bn2_m'], p['bn2_v'], p['b2'])
    si, bi = _fold_bn(p['bni_g'], p['bni_b'], p['bni_m'], p['bni_v'], None)

    tile = lambda v: jnp.tile(v, W)
    sb_out = jnp.stack([tile(s1), tile(b1), tile(s2), tile(b2), tile(p['bs'])],
                       axis=0).astype(jnp.float32)                  # (5, WCout)
    sb_in = jnp.stack([tile(si), tile(bi)], axis=0).astype(jnp.float32)  # (2, WCin)

    # Advisory cost hint only (flops include the banded-matrix zero padding).
    flops = 2 * B * H * (3 * WCin * WCout + 3 * WCout * WCout + WCin * WCout)
    transcendentals = B * H * (2 * WCout + WCin)
    bytes_accessed = int(
        4 * (xp.size + sb_out.size + sb_in.size + B * H * WCout)
        + a1.size * a1.dtype.itemsize + a2.size * a2.dtype.itemsize
        + a_s.size * a_s.dtype.itemsize)

    out_rows = pl.pallas_call(
        _double_conv_kernel,
        out_shape=jax.ShapeDtypeStruct((B, H, WCout), x.dtype),
        grid=(B,),
        in_specs=[
            pl.BlockSpec((1, Hp2, WCin), lambda b: (b, 0, 0)),
            # Weights / scale-bias: constant index_map -> fetched once and kept
            # VMEM-resident across grid steps.
            pl.BlockSpec((3 * WCin, WCout), lambda b: (0, 0)),
            pl.BlockSpec((3 * WCout, WCout), lambda b: (0, 0)),
            pl.BlockSpec((WCin, WCout), lambda b: (0, 0)),
            pl.BlockSpec((5, WCout), lambda b: (0, 0)),
            pl.BlockSpec((2, WCin), lambda b: (0, 0)),
        ],
        out_specs=pl.BlockSpec((1, H, WCout), lambda b: (b, 0, 0)),
        cost_estimate=pl.CostEstimate(flops=flops,
                                      transcendentals=transcendentals,
                                      bytes_accessed=bytes_accessed),
        compiler_params=pltpu.CompilerParams(
            dimension_semantics=("parallel",)),
    )(xp, a1, a2, a_s, sb_out, sb_in)

    return jnp.transpose(out_rows.reshape(B, H, W, Cout), (0, 3, 1, 2))


# --------------------------------------------------------------------------- #
# Pure-JAX reference (same eval-mode BN, same tanh-GELU) for verification.
# --------------------------------------------------------------------------- #
def _reference(x, p, eps=1e-5):
    def conv(h, w, b, pad):
        y = jax.lax.conv_general_dilated(
            h, w, window_strides=(1, 1), padding=((pad, pad), (pad, pad)),
            dimension_numbers=('NCHW', 'OIHW', 'NCHW'))
        return y + b[None, :, None, None]

    def bn(h, g, be, m, v):
        return (h - m[None, :, None, None]) * (
            g[None, :, None, None] / jnp.sqrt(v[None, :, None, None] + eps)
        ) + be[None, :, None, None]

    out = conv(x, p['w1'], p['b1'], 1)
    out = _gelu(bn(out, p['bn1_g'], p['bn1_b'], p['bn1_m'], p['bn1_v']))
    out = conv(out, p['w2'], p['b2'], 1)
    out = _gelu(bn(out, p['bn2_g'], p['bn2_b'], p['bn2_m'], p['bn2_v']))
    res = _gelu(bn(x, p['bni_g'], p['bni_b'], p['bni_m'], p['bni_v']))
    res = conv(res, p['ws'], p['bs'], 0)
    return out + res


if __name__ == "__main__":
    B, Cin, Cout, H, W = 2, 4, 8, 16, 16

    key = jax.random.PRNGKey(0)
    ks = jax.random.split(key, 20)

    def u(k, shape, bound):
        return jax.random.uniform(k, shape, jnp.float32, -bound, bound)

    f1 = 1.0 / (Cin * 9) ** 0.5
    f2 = 1.0 / (Cout * 9) ** 0.5
    fs = 1.0 / (Cin * 1) ** 0.5
    params = dict(
        w1=u(ks[0], (Cout, Cin, 3, 3), f1), b1=u(ks[1], (Cout,), f1),
        w2=u(ks[2], (Cout, Cout, 3, 3), f2), b2=u(ks[3], (Cout,), f2),
        ws=u(ks[4], (Cout, Cin, 1, 1), fs), bs=u(ks[5], (Cout,), fs),
        bn1_g=jax.random.uniform(ks[6], (Cout,), jnp.float32, 0.5, 1.5),
        bn1_b=u(ks[7], (Cout,), 0.5),
        bn1_m=u(ks[8], (Cout,), 0.5),
        bn1_v=jax.random.uniform(ks[9], (Cout,), jnp.float32, 0.5, 1.5),
        bn2_g=jax.random.uniform(ks[10], (Cout,), jnp.float32, 0.5, 1.5),
        bn2_b=u(ks[11], (Cout,), 0.5),
        bn2_m=u(ks[12], (Cout,), 0.5),
        bn2_v=jax.random.uniform(ks[13], (Cout,), jnp.float32, 0.5, 1.5),
        bni_g=jax.random.uniform(ks[14], (Cin,), jnp.float32, 0.5, 1.5),
        bni_b=u(ks[15], (Cin,), 0.5),
        bni_m=u(ks[16], (Cin,), 0.5),
        bni_v=jax.random.uniform(ks[17], (Cin,), jnp.float32, 0.5, 1.5),
    )
    x = jax.random.normal(ks[18], (B, Cin, H, W), dtype=jnp.float32)

    ref = _reference(x, params)

    # f32 MXU path: tight numerical check of the kernel structure.
    out_f32 = jax.block_until_ready(double_conv3x3(x, params, mxu_dtype=jnp.float32))
    assert out_f32.shape == (B, Cout, H, W)
    err32 = float(jnp.max(jnp.abs(out_f32 - ref)))
    assert jnp.allclose(out_f32, ref, atol=1e-4, rtol=1e-4), f"f32 mismatch: {err32}"

    # bf16 MXU path (v6e/v7x throughput + half weight VMEM): looser tolerance
    # as expected from bf16 matmul operands with f32 accumulation.
    out_bf16 = jax.block_until_ready(double_conv3x3(x, params, mxu_dtype=jnp.bfloat16))
    err16 = float(jnp.max(jnp.abs(out_bf16 - ref)))
    assert jnp.allclose(out_bf16, ref, atol=5e-2, rtol=5e-2), f"bf16 mismatch: {err16}"

    print("KERNEL_OK")
</pallas_src>

<mosaic_0001>
module attributes {stable_mosaic.version = 11 : i64} {
  func.func @_double_conv_kernel(%arg0: i32, %arg1: memref<1x18x64xf32, #tpu.memory_space<vmem>>, %arg2: memref<192x128xf32, #tpu.memory_space<vmem>>, %arg3: memref<384x128xf32, #tpu.memory_space<vmem>>, %arg4: memref<64x128xf32, #tpu.memory_space<vmem>>, %arg5: memref<5x128xf32, #tpu.memory_space<vmem>>, %arg6: memref<2x64xf32, #tpu.memory_space<vmem>>, %arg7: memref<1x16x128xf32, #tpu.memory_space<vmem>>) attributes {dimension_semantics = [#tpu.dimension_semantics<parallel>], iteration_bounds = array<i64: 2>, scalar_prefetch = 0 : i64, scratch_operands = 0 : i64, tpu.core_type = #tpu.core_type<tc>, window_params = [{transform_indices = @transform_0, window_bounds = array<i64: 1, 18, 64>}, {pipeline_mode = #tpu.pipeline_mode<synchronous>, transform_indices = @transform_1, window_bounds = array<i64: 192, 128>}, {pipeline_mode = #tpu.pipeline_mode<synchronous>, transform_indices = @transform_2, window_bounds = array<i64: 384, 128>}, {pipeline_mode = #tpu.pipeline_mode<synchronous>, transform_indices = @transform_3, window_bounds = array<i64: 64, 128>}, {pipeline_mode = #tpu.pipeline_mode<synchronous>, transform_indices = @transform_4, window_bounds = array<i64: 5, 128>}, {pipeline_mode = #tpu.pipeline_mode<synchronous>, transform_indices = @transform_5, window_bounds = array<i64: 2, 64>}, {transform_indices = @transform_6, window_bounds = array<i64: 1, 16, 128>}]} {
    %c0 = arith.constant 0 : index
    %c0_0 = arith.constant 0 : index
    %0 = vector.load %arg5[%c0, %c0_0] : memref<5x128xf32, #tpu.memory_space<vmem>>, vector<1x128xf32>
    %c1 = arith.constant 1 : index
    %c0_1 = arith.constant 0 : index
    %1 = vector.load %arg5[%c1, %c0_1] : memref<5x128xf32, #tpu.memory_space<vmem>>, vector<1x128xf32>
    %c2 = arith.constant 2 : index
    %c0_2 = arith.constant 0 : index
    %2 = vector.load %arg5[%c2, %c0_2] : memref<5x128xf32, #tpu.memory_space<vmem>>, vector<1x128xf32>
    %c3 = arith.constant 3 : index
    %c0_3 = arith.constant 0 : index
    %3 = vector.load %arg5[%c3, %c0_3] : memref<5x128xf32, #tpu.memory_space<vmem>>, vector<1x128xf32>
    %c4 = arith.constant 4 : index
    %c0_4 = arith.constant 0 : index
    %4 = vector.load %arg5[%c4, %c0_4] : memref<5x128xf32, #tpu.memory_space<vmem>>, vector<1x128xf32>
    %c0_5 = arith.constant 0 : index
    %c0_6 = arith.constant 0 : index
    %5 = vector.load %arg6[%c0_5, %c0_6] : memref<2x64xf32, #tpu.memory_space<vmem>>, vector<1x64xf32>
    %c1_7 = arith.constant 1 : index
    %c0_8 = arith.constant 0 : index
    %6 = vector.load %arg6[%c1_7, %c0_8] : memref<2x64xf32, #tpu.memory_space<vmem>>, vector<1x64xf32>
    %c0_9 = arith.constant 0 : index
    %c0_10 = arith.constant 0 : index
    %c0_11 = arith.constant 0 : index
    %7 = vector.load %arg1[%c0_9, %c0_10, %c0_11] : memref<1x18x64xf32, #tpu.memory_space<vmem>>, vector<1x16x64xf32>
    %8 = vector.shape_cast %7 : vector<1x16x64xf32> to vector<16x64xf32>
    %c0_12 = arith.constant 0 : index
    %c0_13 = arith.constant 0 : index
    %9 = vector.load %arg2[%c0_12, %c0_13] : memref<192x128xf32, #tpu.memory_space<vmem>>, vector<64x128xf32>
    %cst = arith.constant dense<0.000000e+00> : vector<16x128xf32>
    %10 = tpu.matmul %8, %9, %cst {dimension_numbers = #tpu.dot_dimension_numbers<[1], [0], [0], [1], [0, 0, 1, 1], [], []>} : vector<16x64xf32>, vector<64x128xf32>, vector<16x128xf32> -> vector<16x128xf32>
    %c0_14 = arith.constant 0 : index
    %c1_15 = arith.constant 1 : index
    %c0_16 = arith.constant 0 : index
    %11 = vector.load %arg1[%c0_14, %c1_15, %c0_16] : memref<1x18x64xf32, #tpu.memory_space<vmem>>, vector<1x16x64xf32>
    %12 = vector.shape_cast %11 : vector<1x16x64xf32> to vector<16x64xf32>
    %c64 = arith.constant 64 : index
    %c0_17 = arith.constant 0 : index
    %13 = vector.load %arg2[%c64, %c0_17] : memref<192x128xf32, #tpu.memory_space<vmem>>, vector<64x128xf32>
    %cst_18 = arith.constant dense<0.000000e+00> : vector<16x128xf32>
    %14 = tpu.matmul %12, %13, %cst_18 {dimension_numbers = #tpu.dot_dimension_numbers<[1], [0], [0], [1], [0, 0, 1, 1], [], []>} : vector<16x64xf32>, vector<64x128xf32>, vector<16x128xf32> -> vector<16x128xf32>
    %15 = arith.addf %10, %14 : vector<16x128xf32>
    %c0_19 = arith.constant 0 : index
    %c2_20 = arith.constant 2 : index
    %c0_21 = arith.constant 0 : index
    %16 = vector.load %arg1[%c0_19, %c2_20, %c0_21] : memref<1x18x64xf32, #tpu.memory_space<vmem>>, vector<1x16x64xf32>
    %17 = vector.shape_cast %16 : vector<1x16x64xf32> to vector<16x64xf32>
    %c128 = arith.constant 128 : index
    %c0_22 = arith.constant 0 : index
    %18 = vector.load %arg2[%c128, %c0_22] : memref<192x128xf32, #tpu.memory_space<vmem>>, vector<64x128xf32>
    %cst_23 = arith.constant dense<0.000000e+00> : vector<16x128xf32>
    %19 = tpu.matmul %17, %18, %cst_23 {dimension_numbers = #tpu.dot_dimension_numbers<[1], [0], [0], [1], [0, 0, 1, 1], [], []>} : vector<16x64xf32>, vector<64x128xf32>, vector<16x128xf32> -> vector<16x128xf32>
    %20 = arith.addf %15, %19 : vector<16x128xf32>
    %21 = vector.broadcast %0 : vector<1x128xf32> to vector<16x128xf32>
    %22 = arith.mulf %20, %21 : vector<16x128xf32>
    %23 = vector.broadcast %1 : vector<1x128xf32> to vector<16x128xf32>
    %24 = arith.addf %22, %23 : vector<16x128xf32>
    %25 = arith.mulf %24, %24 : vector<16x128xf32>
    %26 = arith.mulf %24, %25 : vector<16x128xf32>
    %cst_24 = arith.constant 4.471500e-02 : f32
    %27 = vector.broadcast %cst_24 : f32 to vector<16x128xf32>
    %28 = arith.mulf %27, %26 : vector<16x128xf32>
    %29 = arith.addf %24, %28 : vector<16x128xf32>
    %cst_25 = arith.constant 0.797884583 : f32
    %30 = vector.broadcast %cst_25 : f32 to vector<16x128xf32>
    %31 = arith.mulf %30, %29 : vector<16x128xf32>
    %32 = math.tanh %31 : vector<16x128xf32>
    %cst_26 = arith.constant 1.000000e+00 : f32
    %33 = vector.broadcast %cst_26 : f32 to vector<16x128xf32>
    %34 = arith.addf %33, %32 : vector<16x128xf32>
    %cst_27 = arith.constant 5.000000e-01 : f32
    %35 = vector.broadcast %cst_27 : f32 to vector<16x128xf32>
    %36 = arith.mulf %35, %34 : vector<16x128xf32>
    %37 = arith.mulf %24, %36 : vector<16x128xf32>
    %c0_28 = arith.constant 0 : index
    %c0_29 = arith.constant 0 : index
    %38 = vector.load %arg3[%c0_28, %c0_29] : memref<384x128xf32, #tpu.memory_space<vmem>>, vector<128x128xf32>
    %cst_30 = arith.constant dense<0.000000e+00> : vector<16x128xf32>
    %39 = tpu.matmul %37, %38, %cst_30 {dimension_numbers = #tpu.dot_dimension_numbers<[1], [0], [0], [1], [0, 0, 1, 1], [], []>} : vector<16x128xf32>, vector<128x128xf32>, vector<16x128xf32> -> vector<16x128xf32>
    %c128_31 = arith.constant 128 : index
    %c0_32 = arith.constant 0 : index
    %40 = vector.load %arg3[%c128_31, %c0_32] : memref<384x128xf32, #tpu.memory_space<vmem>>, vector<128x128xf32>
    %cst_33 = arith.constant dense<0.000000e+00> : vector<16x128xf32>
    %41 = tpu.matmul %37, %40, %cst_33 {dimension_numbers = #tpu.dot_dimension_numbers<[1], [0], [0], [1], [0, 0, 1, 1], [], []>} : vector<16x128xf32>, vector<128x128xf32>, vector<16x128xf32> -> vector<16x128xf32>
    %c256 = arith.constant 256 : index
    %c0_34 = arith.constant 0 : index
    %42 = vector.load %arg3[%c256, %c0_34] : memref<384x128xf32, #tpu.memory_space<vmem>>, vector<128x128xf32>
    %cst_35 = arith.constant dense<0.000000e+00> : vector<16x128xf32>
    %43 = tpu.matmul %37, %42, %cst_35 {dimension_numbers = #tpu.dot_dimension_numbers<[1], [0], [0], [1], [0, 0, 1, 1], [], []>} : vector<16x128xf32>, vector<128x128xf32>, vector<16x128xf32> -> vector<16x128xf32>
    %44 = tpu.iota {dimensions = array<i32: 0>} : vector<16x128xi32>
    %c1_i32 = arith.constant 1 : i32
    %45 = vector.broadcast %c1_i32 : i32 to vector<16x128xi32>
    %46 = arith.cmpi sge, %44, %45 : vector<16x128xi32>
    %c1_i32_36 = arith.constant 1 : i32
    %47 = tpu.dynamic_rotate %39 by %c1_i32_36 dim 0 : vector<16x128xf32>, i32 -> vector<16x128xf32>
    %cst_37 = arith.constant 0.000000e+00 : f32
    %48 = vector.broadcast %cst_37 : f32 to vector<16x128xf32>
    %49 = arith.select %46, %47, %48 : vector<16x128xi1>, vector<16x128xf32>
    %50 = arith.addf %41, %49 : vector<16x128xf32>
    %c14_i32 = arith.constant 14 : i32
    %51 = vector.broadcast %c14_i32 : i32 to vector<16x128xi32>
    %52 = arith.cmpi sle, %44, %51 : vector<16x128xi32>
    %c15_i32 = arith.constant 15 : i32
    %53 = tpu.dynamic_rotate %43 by %c15_i32 dim 0 : vector<16x128xf32>, i32 -> vector<16x128xf32>
    %cst_38 = arith.constant 0.000000e+00 : f32
    %54 = vector.broadcast %cst_38 : f32 to vector<16x128xf32>
    %55 = arith.select %52, %53, %54 : vector<16x128xi1>, vector<16x128xf32>
    %56 = arith.addf %50, %55 : vector<16x128xf32>
    %57 = vector.broadcast %2 : vector<1x128xf32> to vector<16x128xf32>
    %58 = arith.mulf %56, %57 : vector<16x128xf32>
    %59 = vector.broadcast %3 : vector<1x128xf32> to vector<16x128xf32>
    %60 = arith.addf %58, %59 : vector<16x128xf32>
    %61 = arith.mulf %60, %60 : vector<16x128xf32>
    %62 = arith.mulf %60, %61 : vector<16x128xf32>
    %cst_39 = arith.constant 4.471500e-02 : f32
    %63 = vector.broadcast %cst_39 : f32 to vector<16x128xf32>
    %64 = arith.mulf %63, %62 : vector<16x128xf32>
    %65 = arith.addf %60, %64 : vector<16x128xf32>
    %cst_40 = arith.constant 0.797884583 : f32
    %66 = vector.broadcast %cst_40 : f32 to vector<16x128xf32>
    %67 = arith.mulf %66, %65 : vector<16x128xf32>
    %68 = math.tanh %67 : vector<16x128xf32>
    %cst_41 = arith.constant 1.000000e+00 : f32
    %69 = vector.broadcast %cst_41 : f32 to vector<16x128xf32>
    %70 = arith.addf %69, %68 : vector<16x128xf32>
    %cst_42 = arith.constant 5.000000e-01 : f32
    %71 = vector.broadcast %cst_42 : f32 to vector<16x128xf32>
    %72 = arith.mulf %71, %70 : vector<16x128xf32>
    %73 = arith.mulf %60, %72 : vector<16x128xf32>
    %c0_43 = arith.constant 0 : index
    %c1_44 = arith.constant 1 : index
    %c0_45 = arith.constant 0 : index
    %74 = vector.load %arg1[%c0_43, %c1_44, %c0_45] : memref<1x18x64xf32, #tpu.memory_space<vmem>>, vector<1x16x64xf32>
    %75 = vector.shape_cast %74 : vector<1x16x64xf32> to vector<16x64xf32>
    %76 = vector.broadcast %5 : vector<1x64xf32> to vector<16x64xf32>
    %77 = arith.mulf %75, %76 : vector<16x64xf32>
    %78 = vector.broadcast %6 : vector<1x64xf32> to vector<16x64xf32>
    %79 = arith.addf %77, %78 : vector<16x64xf32>
    %80 = arith.mulf %79, %79 : vector<16x64xf32>
    %81 = arith.mulf %79, %80 : vector<16x64xf32>
    %cst_46 = arith.constant 4.471500e-02 : f32
    %82 = vector.broadcast %cst_46 : f32 to vector<16x64xf32>
    %83 = arith.mulf %82, %81 : vector<16x64xf32>
    %84 = arith.addf %79, %83 : vector<16x64xf32>
    %cst_47 = arith.constant 0.797884583 : f32
    %85 = vector.broadcast %cst_47 : f32 to vector<16x64xf32>
    %86 = arith.mulf %85, %84 : vector<16x64xf32>
    %87 = math.tanh %86 : vector<16x64xf32>
    %cst_48 = arith.constant 1.000000e+00 : f32
    %88 = vector.broadcast %cst_48 : f32 to vector<16x64xf32>
    %89 = arith.addf %88, %87 : vector<16x64xf32>
    %cst_49 = arith.constant 5.000000e-01 : f32
    %90 = vector.broadcast %cst_49 : f32 to vector<16x64xf32>
    %91 = arith.mulf %90, %89 : vector<16x64xf32>
    %92 = arith.mulf %79, %91 : vector<16x64xf32>
    %c0_50 = arith.constant 0 : index
    %c0_51 = arith.constant 0 : index
    %93 = vector.load %arg4[%c0_50, %c0_51] : memref<64x128xf32, #tpu.memory_space<vmem>>, vector<64x128xf32>
    %cst_52 = arith.constant dense<0.000000e+00> : vector<16x128xf32>
    %94 = tpu.matmul %92, %93, %cst_52 {dimension_numbers = #tpu.dot_dimension_numbers<[1], [0], [0], [1], [0, 0, 1, 1], [], []>} : vector<16x64xf32>, vector<64x128xf32>, vector<16x128xf32> -> vector<16x128xf32>
    %95 = vector.broadcast %4 : vector<1x128xf32> to vector<16x128xf32>
    %96 = arith.addf %94, %95 : vector<16x128xf32>
    %97 = arith.addf %73, %96 : vector<16x128xf32>
    %c0_53 = arith.constant 0 : index
    %c0_54 = arith.constant 0 : index
    %c0_55 = arith.constant 0 : index
    %98 = vector.load %arg7[%c0_53, %c0_54, %c0_55] : memref<1x16x128xf32, #tpu.memory_space<vmem>>, vector<1x16x128xf32>
    %99 = vector.shape_cast %98 : vector<1x16x128xf32> to vector<16x128xf32>
    %100 = vector.shape_cast %97 : vector<16x128xf32> to vector<1x16x128xf32>
    tpu.vector_store %arg7[%c0_53, %c0_54, %c0_55], %100 {strides = array<i32>} : memref<1x16x128xf32, #tpu.memory_space<vmem>>, vector<1x16x128xf32>,
    return
  }
  func.func @transform_0(%arg0: i32) -> (i32, i32, i32) {
    %c0_i32 = arith.constant 0 : i32
    %c0_i32_0 = arith.constant 0 : i32
    %c0_i32_1 = arith.constant 0 : i32
    return %arg0, %c0_i32, %c0_i32_0 : i32, i32, i32
  }
  func.func @transform_1(%arg0: i32) -> (i32, i32) {
    %c0_i32 = arith.constant 0 : i32
    %c0_i32_0 = arith.constant 0 : i32
    %c0_i32_1 = arith.constant 0 : i32
    return %c0_i32, %c0_i32_0 : i32, i32
  }
  func.func @transform_2(%arg0: i32) -> (i32, i32) {
    %c0_i32 = arith.constant 0 : i32
    %c0_i32_0 = arith.constant 0 : i32
    %c0_i32_1 = arith.constant 0 : i32
    return %c0_i32, %c0_i32_0 : i32, i32
  }
  func.func @transform_3(%arg0: i32) -> (i32, i32) {
    %c0_i32 = arith.constant 0 : i32
    %c0_i32_0 = arith.constant 0 : i32
    %c0_i32_1 = arith.constant 0 : i32
    return %c0_i32, %c0_i32_0 : i32, i32
  }
  func.func @transform_4(%arg0: i32) -> (i32, i32) {
    %c0_i32 = arith.constant 0 : i32
    %c0_i32_0 = arith.constant 0 : i32
    %c0_i32_1 = arith.constant 0 : i32
    return %c0_i32, %c0_i32_0 : i32, i32
  }
  func.func @transform_5(%arg0: i32) -> (i32, i32) {
    %c0_i32 = arith.constant 0 : i32
    %c0_i32_0 = arith.constant 0 : i32
    %c0_i32_1 = arith.constant 0 : i32
    return %c0_i32, %c0_i32_0 : i32, i32
  }
  func.func @transform_6(%arg0: i32) -> (i32, i32, i32) {
    %c0_i32 = arith.constant 0 : i32
    %c0_i32_0 = arith.constant 0 : i32
    %c0_i32_1 = arith.constant 0 : i32
    return %arg0, %c0_i32, %c0_i32_0 : i32, i32, i32
  }
}

</mosaic_0001>

<bundles_post_ra>
// kernel: tpu_custom_call.1
= control target key start
LH: loop header
LB: loop body
LE: loop exit
PB: predicated region body
PF: predicated region fallthrough
CT: control target
= control target key end

     0   :  { %11 = vsyncpa [#allocation3], 0  ;;  %s1233_s0 = inlined_call_operand.vmem [shape: f32[2,18,64], index: 0, kind: input, shape index: {}]   ;;  %s1234_s1 = inlined_call_operand.hbm [shape: f32[192,128], index: 1, kind: input, shape index: {}]   ;;  %s1235_s2 = inlined_call_operand.hbm [shape: f32[384,128], index: 2, kind: input, shape index: {}]   ;;  %s1236_s3 = inlined_call_operand.vmem [shape: f32[64,128], index: 3, kind: input, shape index: {}]   ;;  %s1237_s4 = inlined_call_operand.vmem [shape: f32[5,128], index: 4, kind: input, shape index: {}]   ;;  %s1238_s5 = inlined_call_operand.vmem [shape: f32[2,64], index: 5, kind: input, shape index: {}]   ;;  %s1239_s6 = inlined_call_operand.hbm [shape: f32[2,16,128], index: 6, kind: output, shape index: {}]  }
   0x1   :  { %12 = vsyncpa [#allocation6], 0 }
   0x2   :  { %13 = vsyncpa [#allocation4], 0 }
   0x3   :  { %15 = vsyncpa [#allocation4 + $0x1], 0  ;;  %s1046_s21 = smov 0   ;;  %s1048_s22 = smov 0  }
   0x4   :  { %s1050_s23 = smov 0   ;;  %s1052_s24 = smov 0  }
   0x5 LB: > { %s1067_s25 = sadd.s32 4294967295, %s1003_s24   ;;  %s765_s26 = sadd.s32 4294967294, %s1003_s24   ;;  %s1003_s24 = sphi %s1052_s24, %s1246_s24   ;;  %s999_s23 = sphi %s1050_s23, %s1245_s23   ;;  %s995_s22 = sphi %s1048_s22, %s1244_s22   ;;  %s991_s21 = sphi %s1046_s21, %s1243_s21  }
   0x6   : > { %s1071_s27 = sadd.s32 1, %s1003_s24   ;;  %s159_s28 = sadd.s32 1, %s999_s23 }
   0x7   : > { %s156_s29 = ssub.s32 %s1003_s24, %s1071_s27  ;;  %p169_p0 = scmp.ne.s32.totalorder %s999_s23, %s995_s22 }
   0x8   : > { %p157_p1 = scmp.eq.s32.totalorder %s156_s29, 0  ;;  %p170_p2 = scmp.eq.s32.totalorder %s1067_s25, 1 }
   0x9   : > { %p175_p3 = scmp.ne.s32.totalorder %s995_s22, %s991_s21  ;;  %p176_p4 = scmp.eq.s32.totalorder %s765_s26, 1 }
   0xa   : > { %s1082_s30 = scalar_select %p157_p1, %s999_s23, %s159_s28  }
   0xb   : > { %p1084_p5 = por %p170_p2, %p169_p0  ;;  %p1088_p6 = por %p176_p4, %p175_p3 }
   0xc   : > { %p766_p7 = scmp.ge.s32.totalorder %s1003_s24, 1  ;;  %p183_p8 = scmp.lt.s32.totalorder %s1003_s24, 3 }
   0xd   : > { %p811_p9 = scmp.eq.s32.totalorder %s1067_s25, 0  ;;  %s194_s12 = sshll.u32 %s1234_s1, 4  ;;  %s195_s12 = int_to_ptr.hbm [resolvable:$true] %s194_s12 }
   0xe   : > { %p1095_p10 = pnand %p766_p7, %p183_p8  ;;  %s1005_s13 = smov [#allocation2]  }
   0xf   : > { %s196_s14 = sshll.u32 %s1005_s13, 4  ;;  %s208_s17 = sshll.u32 %s1235_s2, 4  ;;  %s197_s14 = int_to_ptr.vmem [resolvable:$true] %s196_s14  ;;  %s209_s17 = int_to_ptr.hbm [resolvable:$true] %s208_s17 }
  0x10   : > { %p800_p11 = pneg %p1095_p10  ;;  %s1006_s18 = smov 128  }
  0x11   : > { %s1007_s19 = smov 8   ;;  %s1008_s20 = smov [#allocation5]  }
  0x12   : > { %p801_p12 = pnand %p811_p9, %p800_p11  ;;  %s210_s26 = sshll.u32 %s1008_s20, 4  ;;  %s211_s26 = int_to_ptr.vmem [resolvable:$true] %s210_s26 }
  0x13   : > { %243 = sbr.rel (%p1095_p10) target bundleno = 385 (0x181), region = 44 }
  0x14   : > { %803 = dma.hbm_to_vmem [thread:$0]  (!%p801_p12), %s195_s12, 3072, %s197_s14, [#allocation3], %s1006_s18, %s1006_s18, %s1007_s19  }
  0x15   : > { %806 = dma.hbm_to_vmem [thread:$0]  (!%p801_p12), %s209_s17, 6144, %s211_s26, [#allocation6], %s1006_s18, %s1006_s18, %s1007_s19  }
  0x18   : > { %978 = dma.done.wait (%p811_p9), [#allocation3], 3072  }
  0x19   : > { %980 = vsyncadd (%p811_p9), [#allocation3], 4294964224 }
  0x1a   : > { %982 = dma.done.wait (%p811_p9), [#allocation6], 6144  }
  0x1b   : > { %984 = vsyncadd (%p811_p9), [#allocation6], 4294961152  ;;  %p279_p13 = scmp.lt.s32.totalorder %s1067_s25, 1  ;;  %v379_v0 = vld [vmem:[#allocation2 + $0xb8] sm:$0xff]  ;;  %v378_v1 = vld [vmem:[#allocation2 + $0xb0] sm:$0xff]  ;;  %vm311_vm0 = vcmask 523264  }
  0x1c   : > { %v310_v2 = vld [vmem:[#allocation2 + $0x78] sm:$0xff]  ;;  %394 = vmatpush.msra.mxu2 %v379_v0  ;;  %v309_v4 = vld [vmem:[#allocation2 + $0x70] sm:$0xff]  ;;  %v377_v5 = vld [vmem:[#allocation2 + $0xa8] sm:$0xff]  ;;  %s276_s10 = sand.u32 1, %s995_s22   ;;  %s788_s12 = sshll.u32 %s1067_s25, 4 }
  0x1d   : > { %326 = vmatpush.msra.mxu0 %v310_v2  ;;  %v300_v3 = vld [vmem:[#allocation2 + $0x38] sm:$0xff]  ;;  %v299_v6 = vld [vmem:[#allocation2 + $0x30] sm:$0xff]  ;;  %v308_v7 = vld [vmem:[#allocation2 + $0x68] sm:$0xff]  ;;  %s280_s28 = scalar_select %p279_p13, %s1067_s25, 1 }
  0x1e   : > { %355 = vmatpush.msra.mxu1 %v300_v3  ;;  %395 = vmatpush.msra.mxu2 %v378_v1  ;;  %v298_v8 = vld [vmem:[#allocation2 + $0x28] sm:$0xff]  ;;  %v376_v9 = vld [vmem:[#allocation2 + $0xa0] sm:$0xff]  ;;  %v375_v12 = vld [vmem:[#allocation2 + $0x98] sm:$0xff]  ;;  %s677_s17 = scalar_lea.hbm %s1239_s6, %s788_s12  ;;  %s666_s20 = scalar_lea.sflag [#allocation4], %s276_s10 }
  0x1f   : > { %327 = vmatpush.msra.mxu0 %v309_v4  ;;  %v307_v10 = vld [vmem:[#allocation2 + $0x60] sm:$0xff]  ;;  %v306_v13 = vld [vmem:[#allocation2 + $0x58] sm:$0xff]  ;;  %s789_s29 = smul.u32 24, %s280_s28  ;;  %v374_v14 = vld [vmem:[#allocation2 + $0x90] sm:$0xff]  ;;  %s680_s25 = sshll.u32 %s677_s17, 4  ;;  %s681_s25 = int_to_ptr.hbm [resolvable:$true] %s680_s25 }
  0x20   : > { %356 = vmatpush.msra.mxu1 %v299_v6  ;;  %396 = vmatpush.msra.mxu2 %v377_v5  ;;  %v297_v11 = vld [vmem:[#allocation2 + $0x20] sm:$0xff]  ;;  %v296_v15 = vld [vmem:[#allocation2 + $0x18] sm:$0xff]  ;;  %v305_v16 = vld [vmem:[#allocation2 + $0x50] sm:$0xff]  ;;  %s947_s26 = sshra.s32 %s681_s25, 4  ;;  %s948_s26 = int_to_ptr.hbm [resolvable:$true] %s947_s26 }
  0x21   : > { %328 = vmatpush.msra.mxu0 %v308_v7  ;;  %v373_v17 = vld [vmem:[#allocation2 + $0x88] sm:$0xff]  ;;  %v295_v18 = vld [vmem:[#allocation2 + $0x10] sm:$0xff]  ;;  %v372_v19 = vld [vmem:[#allocation2 + $0x80] sm:$0xff]  ;;  %s283_s11 = scalar_lea.vmem %s1233_s0, %s789_s29  ;;  %s949_s28 = scalar_lea.hbm %s948_s26, 16 }
  0x22   : > { %357 = vmatpush.msra.mxu1 %v298_v8  ;;  %397 = vmatpush.msra.mxu2 %v376_v9  ;;  %v304_v20 = vld [vmem:[#allocation2 + $0x48] sm:$0xff]  ;;  %v303_v22 = vld [vmem:[#allocation2 + $0x40] sm:$0xff]  ;;  %v450_v30 = vld [vmem:[#allocation5 + $0x78] sm:$0xff]  ;;  %p950_p0 = scmp.ne.s32.totalorder %s948_s26, %s949_s28  ;;  %p954_p3 = scmp.lt.s32.totalorder %s948_s26, %s1239_s6 }
  0x23   : > { %329 = vmatpush.msra.mxu0 %v307_v10  ;;  %v294_v21 = vld [vmem:[#allocation2 + $0x8] sm:$0xff]  ;;  %v293_v24 = vld [vmem:[#allocation2] sm:$0xff]  ;;  %v505_v31 = vld [vmem:[#allocation5 + $0x178] sm:$0xff]  ;;  %451 = vmatpush.msra.mxu3 %v450_v30 }
  0x24   : > { %358 = vmatpush.msra.mxu1 %v297_v11  ;;  %398 = vmatpush.msra.mxu2 %v375_v12  ;;  %v370_v23 = vld [vmem:[%s283_s11 + $0x2] sm:$0xff]  ;;  %v371_v27 = vld [vmem:[%s283_s11 + $0xa] sm:$0xff]  ;;  %v489_v32 = vld [vmem:[#allocation5 + $0xf8] sm:$0xff]  ;;  %p951_p1 = pnand %p950_p0, %p1084_p5 }
  0x25   : > { %330 = vmatpush.msra.mxu0 %v306_v13  ;;  %v1124_v25 = vld [vmem:[%s283_s11 + $0x1] sm:$0xff]  ;;  %v1130_v28 = vld [vmem:[%s283_s11 + $0x9] sm:$0xff]  ;;  %v446_v42 = vld [vmem:[#allocation5 + $0x58] sm:$0xff] }
  0x26   : > { %359 = vmatpush.msra.mxu1 %v296_v15  ;;  %399 = vmatpush.msra.mxu2 %v374_v14  ;;  %v291_v26 = vld [vmem:[%s283_s11] sm:$0xff]  ;;  %v292_v29 = vld [vmem:[%s283_s11 + $0x8] sm:$0xff]  ;;  %v449_v33 = vld [vmem:[#allocation5 + $0x70] sm:$0xff]  ;;  %s773_s11 = sshll.u32 %s276_s10, 4  ;;  %p952_p2 = pneg %p951_p1 }
  0x27   : > { %331 = vmatpush.msra.mxu0 %v305_v16  ;;  %v504_v34 = vld [vmem:[#allocation5 + $0x170] sm:$0xff]  ;;  %452 = vmatpush.msra.mxu3 %v449_v33  ;;  %v448_v36 = vld [vmem:[#allocation5 + $0x68] sm:$0xff]  ;;  %v447_v39 = vld [vmem:[#allocation5 + $0x60] sm:$0xff]  ;;  %s278_s18 = scalar_lea.vmem [#allocation7], %s773_s11  ;;  %s953_s11 = scalar_lea.hbm %s1239_s6, 32 }
  0x28   : > { %360 = vmatpush.msra.mxu1 %v295_v18  ;;  %400 = vmatpush.msra.mxu2 %v373_v17  ;;  %v488_v35 = vld [vmem:[#allocation5 + $0xf0] sm:$0xff]  ;;  %v503_v37 = vld [vmem:[#allocation5 + $0x168] sm:$0xff]  ;;  %v502_v40 = vld [vmem:[#allocation5 + $0x160] sm:$0xff]  ;;  %s678_s19 = sshll.u32 %s278_s18, 4  ;;  %p955_p4 = scmp.lt.s32.totalorder %s953_s11, %s949_s28  ;;  %s679_s19 = int_to_ptr.vmem [resolvable:$true] %s678_s19 }
  0x29   : > { %332 = vmatpush.msra.mxu0 %v304_v20  ;;  %v487_v38 = vld [vmem:[#allocation5 + $0xe8] sm:$0xff]  ;;  %453 = vmatpush.msra.mxu3 %v448_v36  ;;  %v486_v41 = vld [vmem:[#allocation5 + $0xe0] sm:$0xff]  ;;  %v501_v43 = vld [vmem:[#allocation5 + $0x158] sm:$0xff] }
  0x2a   : > { %361 = vmatpush.msra.mxu1 %v294_v21  ;;  %401 = vmatpush.msra.mxu2 %v372_v19  ;;  %v485_v44 = vld [vmem:[#allocation5 + $0xd8] sm:$0xff]  ;;  %v445_v45 = vld [vmem:[#allocation5 + $0x50] sm:$0xff]  ;;  %v444_v48 = vld [vmem:[#allocation5 + $0x48] sm:$0xff]  ;;  %p956_p7 = por %p955_p4, %p954_p3 }
  0x2b   : > { %333 = vmatpush.msra.mxu0 %v303_v22  ;;  %779 = vmatmul.msk.f32.vlgmr.msra.gmra.mxu2 %vm311_vm0, %v370_v23  ;;  %v500_v46 = vld [vmem:[#allocation5 + $0x150] sm:$0xff]  ;;  %v499_v49 = vld [vmem:[#allocation5 + $0x148] sm:$0xff]  ;;  %v443_v51 = vld [vmem:[#allocation5 + $0x40] sm:$0xff] }
  0x2c   : > { %362 = vmatpush.msra.mxu1 %v293_v24  ;;  %775 = vmatmul.msk.f32.vlgmr.msra.gmra.mxu0 %vm311_vm0, %v1124_v25  ;;  %v484_v47 = vld [vmem:[#allocation5 + $0xd0] sm:$0xff]  ;;  %v483_v50 = vld [vmem:[#allocation5 + $0xc8] sm:$0xff]  ;;  %v498_v52 = vld [vmem:[#allocation5 + $0x140] sm:$0xff]  ;;  %p957_p8 = pnand %p956_p7, %p952_p2 }
  0x2d   : > { %777 = vmatmul.msk.f32.vlgmr.msra.gmra.mxu1 %vm311_vm0, %v291_v26  ;;  %506 = vmatpush.msrb.mxu0 %v505_v31  ;;  %v482_v53 = vld [vmem:[#allocation5 + $0xc0] sm:$0xff]  ;;  %v442_v55 = vld [vmem:[#allocation5 + $0x38] sm:$0xff]  ;;  %v441_v58 = vld [vmem:[#allocation5 + $0x30] sm:$0xff] }
  0x2e   : > { %541 = vmatpush.msrb.mxu1 %v489_v32  ;;  %454 = vmatpush.msra.mxu3 %v447_v39  ;;  %v854_v54 = vld [vmem:[%s1238_s5] ss:$0 sm:$0xff]  ;;  %v497_v56 = vld [vmem:[#allocation5 + $0x138] sm:$0xff]  ;;  %v496_v59 = vld [vmem:[#allocation5 + $0x130] sm:$0xff] }
  0x2f   : > { %507 = vmatpush.msrb.mxu0 %v504_v34  ;;  %v481_v57 = vld [vmem:[#allocation5 + $0xb8] sm:$0xff]  ;;  %v480_v60 = vld [vmem:[#allocation5 + $0xb0] sm:$0xff]  ;;  %v440_v61 = vld [vmem:[#allocation5 + $0x28] sm:$0xff]  ;;  %v600_v2 = vmul.f32 %v854_v54, %v1124_v25  ;;  %v601_v18 = vmul.f32 %v854_v54, %v1130_v28 }
  0x30   : > { %542 = vmatpush.msrb.mxu1 %v488_v35  ;;  %455 = vmatpush.msra.mxu3 %v446_v42  ;;  %v495_v62 = vld [vmem:[#allocation5 + $0x128] sm:$0xff]  ;;  %v439_v0 = vld [vmem:[#allocation5 + $0x20] sm:$0xff]  ;;  %v438_v5 = vld [vmem:[#allocation5 + $0x18] sm:$0xff] }
  0x31   : > { %508 = vmatpush.msrb.mxu0 %v503_v37  ;;  %v479_v63 = vld [vmem:[#allocation5 + $0xa8] sm:$0xff]  ;;  %v494_v1 = vld [vmem:[#allocation5 + $0x120] sm:$0xff]  ;;  %v493_v6 = vld [vmem:[#allocation5 + $0x118] sm:$0xff] }
  0x32   : > { %543 = vmatpush.msrb.mxu1 %v487_v38  ;;  %456 = vmatpush.msra.mxu3 %v445_v45  ;;  %v855_v3 = vld [vmem:[%s1238_s5 + $0x1] ss:$0 sm:$0xff]  ;;  %v477_v7 = vld [vmem:[#allocation5 + $0x98] sm:$0xff]  ;;  %v437_v8 = vld [vmem:[#allocation5 + $0x10] sm:$0xff] }
  0x33   : > { %780 = vmatmul.msk.f32.gmra.mxu2 %vm311_vm0, %v371_v27  ;;  %509 = vmatpush.msrb.mxu0 %v502_v40  ;;  %v478_v4 = vld [vmem:[#allocation5 + $0xa0] sm:$0xff]  ;;  %v492_v9 = vld [vmem:[#allocation5 + $0x110] sm:$0xff]  ;;  %v1143_v10 = vadd.f32 %v855_v3, %v600_v2  ;;  %v436_v12 = vld [vmem:[#allocation5 + $0x8] sm:$0xff]  ;;  %v1149_v24 = vadd.f32 %v855_v3, %v601_v18 }
  0x34   : > { %776 = vmatmul.msk.f32.gmra.mxu0 %vm311_vm0, %v1130_v28  ;;  %544 = vmatpush.msrb.mxu1 %v486_v41  ;;  %v476_v11 = vld [vmem:[#allocation5 + $0x90] sm:$0xff]  ;;  %v491_v13 = vld [vmem:[#allocation5 + $0x108] sm:$0xff]  ;;  %v435_v15 = vld [vmem:[#allocation5] sm:$0xff] }
  0x35   : > { %778 = vmatmul.msk.f32.gmra.mxu1 %vm311_vm0, %v292_v29  ;;  %510 = vmatpush.msrb.mxu0 %v501_v43  ;;  %v475_v14 = vld [vmem:[#allocation5 + $0x88] sm:$0xff]  ;;  %v490_v16 = vld [vmem:[#allocation5 + $0x100] sm:$0xff]  ;;  %v605_v17 = vmul.f32 %v1143_v10, %v1143_v10  ;;  %v606_v30 = vmul.f32 %v1149_v24, %v1149_v24  ;;  %v630_v37 = vld [vmem:[%s1236_s3 + $0x38] sm:$0xff] }
  0x36   : > { %545 = vmatpush.msrb.mxu1 %v485_v44  ;;  %457 = vmatpush.msra.mxu3 %v444_v48  ;;  %v474_v21 = vld [vmem:[#allocation5 + $0x80] sm:$0xff]  ;;  %v629_v38 = vld [vmem:[%s1236_s3 + $0x30] sm:$0xff]  ;;  %v628_v44 = vld [vmem:[%s1236_s3 + $0x28] sm:$0xff] }
  0x37   : > { %511 = vmatpush.msrb.mxu0 %v500_v46  ;;  %v607_v23 = vmul.f32 %v605_v17, %v1143_v10  ;;  %v856_v25 = vld [vmem:[%s1237_s4] ss:$0 sm:$0xff]  ;;  %v857_v28 = vld [vmem:[%s1237_s4 + $0x1] ss:$0 sm:$0xff]  ;;  %v608_v40 = vmul.f32 %v606_v30, %v1149_v24  ;;  %646 = vmatpush.msrb.mxu2 %v630_v37  ;;  %v529_v17 = vlaneseq }
  0x38   : > { %546 = vmatpush.msrb.mxu1 %v484_v47  ;;  %458 = vmatpush.msra.mxu3 %v443_v51 }
  0x39   : > { %512 = vmatpush.msrb.mxu0 %v499_v49  ;;  %v609_v29 = vmul.f32 0.044715, %v607_v23  ;;  %v610_v46 = vmul.f32 0.044715, %v608_v40  ;;  %647 = vmatpush.msrb.mxu2 %v629_v38  ;;  %v627_v49 = vld [vmem:[%s1236_s3 + $0x20] sm:$0xff] }
  0x3a   : > { %547 = vmatpush.msrb.mxu1 %v483_v50  ;;  %459 = vmatpush.msra.mxu3 %v442_v55 }
  0x3b   : > { %513 = vmatpush.msrb.mxu0 %v498_v52  ;;  %v611_v39 = vadd.f32 %v609_v29, %v1143_v10  ;;  %v612_v50 = vadd.f32 %v610_v46, %v1149_v24  ;;  %648 = vmatpush.msrb.mxu2 %v628_v44 }
  0x3c   : > { %548 = vmatpush.msrb.mxu1 %v482_v53  ;;  %460 = vmatpush.msra.mxu3 %v441_v58  ;;  %v626_v53 = vld [vmem:[%s1236_s3 + $0x18] sm:$0xff] }
  0x3d   : > { %514 = vmatpush.msrb.mxu0 %v497_v56  ;;  %v613_v45 = vmul.f32 0.7978846, %v611_v39  ;;  %v614_v54 = vmul.f32 0.7978846, %v612_v50  ;;  %649 = vmatpush.msrb.mxu2 %v627_v49  ;;  %v859_v39 = vld [vmem:[%s1237_s4 + $0x3] ss:$0 sm:$0xff] }
  0x3e   : > { %549 = vmatpush.msrb.mxu1 %v481_v57  ;;  %461 = vmatpush.msra.mxu3 %v440_v61  ;;  %v625_v57 = vld [vmem:[%s1236_s3 + $0x10] sm:$0xff] }
  0x3f   : > { %515 = vmatpush.msrb.mxu0 %v496_v59  ;;  %861 = vtanh.f32 %v613_v45  ;;  %650 = vmatpush.msrb.mxu2 %v626_v53 }
  0x40   : > { %550 = vmatpush.msrb.mxu1 %v480_v60  ;;  %462 = vmatpush.msra.mxu3 %v439_v0  ;;  %863 = vtanh.f32 %v614_v54  ;;  %v624_v60 = vld [vmem:[%s1236_s3 + $0x8] sm:$0xff] }
  0x41   : > { %516 = vmatpush.msrb.mxu0 %v495_v62  ;;  %651 = vmatpush.msrb.mxu2 %v625_v57 }
  0x42   : > { %551 = vmatpush.msrb.mxu1 %v479_v63  ;;  %463 = vmatpush.msra.mxu3 %v438_v5  ;;  %v623_v63 = vld [vmem:[%s1236_s3] sm:$0xff] }
  0x43   : > { %517 = vmatpush.msrb.mxu0 %v494_v1  ;;  %652 = vmatpush.msrb.mxu2 %v624_v60 }
  0x44   : > { %552 = vmatpush.msrb.mxu1 %v478_v4  ;;  %464 = vmatpush.msra.mxu3 %v437_v8 }
  0x45   : > { %518 = vmatpush.msrb.mxu0 %v493_v6  ;;  %v862_v58 = vpop.eup %861  ;;  %653 = vmatpush.msrb.mxu2 %v623_v63 }
  0x46   : > { %553 = vmatpush.msrb.mxu1 %v477_v7  ;;  %465 = vmatpush.msra.mxu3 %v436_v12  ;;  %v617_v61 = vadd.f32 1.0, %v862_v58  ;;  %v864_v1 = vpop.eup %863 }
  0x47   : > { %519 = vmatpush.msrb.mxu0 %v492_v9  ;;  %v618_v4 = vadd.f32 1.0, %v864_v1 }
  0x48   : > { %554 = vmatpush.msrb.mxu1 %v476_v11  ;;  %466 = vmatpush.msra.mxu3 %v435_v15  ;;  %v619_v0 = vmul.f32 0.5, %v617_v61 }
  0x49   : > { %520 = vmatpush.msrb.mxu0 %v491_v13  ;;  %v620_v8 = vmul.f32 0.5, %v618_v4 }
  0x4a   : > { %555 = vmatpush.msrb.mxu1 %v475_v14  ;;  %v621_v3 = vmul.f32 %v619_v0, %v1143_v10 }
  0x4b   : > { %521 = vmatpush.msrb.mxu0 %v490_v16  ;;  %v622_v12 = vmul.f32 %v620_v8, %v1149_v24 }
  0x4c   : > { %556 = vmatpush.msrb.mxu1 %v474_v21  ;;  %781 = vmatmul.msk.f32.vlgmr.msrb.gmra.mxu2 %vm311_vm0, %v621_v3 }
  0x54   : > { %782 = vmatmul.msk.f32.gmra.mxu2 %vm311_vm0, %v622_v12 }
  0xa9   : > { %v335_v19 = vpop.f32.mrf.mxu0 }
  0xaa   : > { %v364_v20 = vpop.f32.mrf.mxu1 }
  0xab   : > { %v365_v22 = vadd.f32 %v364_v20, %v335_v19  ;;  %v530_v20 = vshrl.u32 %v529_v17, 7 }
  0xad   : > { %vm568_vm1 = vcmp.lt.s32.totalorder %v530_v20, 7  ;;  %vm536_vm2 = vcmp.lt.s32.totalorder %v530_v20, 1  ;;  %vm532_vm3 = vcmp.ge.s32.totalorder %v530_v20, 1 }
  0xae   : > { %v403_v26 = vpop.f32.mrf.mxu2 }
  0xaf   : > { %v409_v27 = vadd.f32 %v403_v26, %v365_v22  ;;  %v531_v22 = vadd.s32 8, %v530_v20 }
  0xb1   : > { %v412_v31 = vmul.f32 %v856_v25, %v409_v27  ;;  %v338_v32 = vpop.f32.mrf.mxu0  ;;  %vm565_vm4 = vcmp.le.s32.totalorder %v531_v22, 14 }
  0xb2   : > { %v367_v33 = vpop.f32.mrf.mxu1 }
  0xb3   : > { %v415_v34 = vadd.f32 %v857_v28, %v412_v31  ;;  %v368_v35 = vadd.f32 %v367_v33, %v338_v32 }
  0xb5   : > { %v417_v36 = vmul.f32 %v415_v34, %v415_v34 }
  0xb6   : > { %v406_v41 = vpop.f32.mrf.mxu2 }
  0xb7   : > { %v410_v42 = vadd.f32 %v406_v41, %v368_v35  ;;  %v419_v43 = vmul.f32 %v417_v36, %v415_v34 }
  0xb9   : > { %v413_v47 = vmul.f32 %v856_v25, %v410_v42  ;;  %v421_v48 = vmul.f32 0.044715, %v419_v43 }
  0xbb   : > { %v416_v51 = vadd.f32 %v857_v28, %v413_v47  ;;  %v423_v52 = vadd.f32 %v421_v48, %v415_v34 }
  0xbd   : > { %v418_v55 = vmul.f32 %v416_v51, %v416_v51  ;;  %v425_v56 = vmul.f32 0.7978846, %v423_v52 }
  0xbf   : > { %865 = vtanh.f32 %v425_v56  ;;  %v420_v59 = vmul.f32 %v418_v55, %v416_v51 }
  0xc1   : > { %v422_v62 = vmul.f32 0.044715, %v420_v59  ;;  %v860_v59 = vld [vmem:[%s1237_s4 + $0x4] ss:$0 sm:$0xff] }
  0xc3   : > { %v424_v2 = vadd.f32 %v422_v62, %v416_v51 }
  0xc5   : > { %v866_v5 = vpop.eup %865  ;;  %v426_v6 = vmul.f32 0.7978846, %v424_v2 }
  0xc6   : > { %v429_v7 = vadd.f32 1.0, %v866_v5 }
  0xc7   : > { %867 = vtanh.f32 %v426_v6 }
  0xc8   : > { %v431_v9 = vmul.f32 0.5, %v429_v7 }
  0xca   : > { %v433_v11 = vmul.f32 %v431_v9, %v415_v34  ;;  %v858_v34 = vld [vmem:[%s1237_s4 + $0x2] ss:$0 sm:$0xff] }
  0xcc   : > { %467 = vmatmul.f32.vlgmr.msra.gmra.mxu3 %v433_v11  ;;  %522 = vmatmul.f32.vlgmr.msrb.gmra.mxu0 %v433_v11 }
  0xcd   : > { %v868_v13 = vpop.eup %867  ;;  %557 = vmatmul.f32.vlgmr.msrb.gmra.mxu1 %v433_v11 }
  0xce   : > { %v430_v14 = vadd.f32 1.0, %v868_v13 }
  0xd0   : > { %v432_v10 = vmul.f32 0.5, %v430_v14 }
  0xd2   : > { %v434_v15 = vmul.f32 %v432_v10, %v416_v51  ;;  %v655_v51 = vpop.f32.mrf.mxu2 }
  0xd3   : > { %v656_v3 = vadd.f32 %v860_v59, %v655_v51 }
  0xd4   : > { %470 = vmatmul.f32.gmra.mxu3 %v434_v15  ;;  %525 = vmatmul.f32.gmra.mxu0 %v434_v15 }
  0xd5   : > { %560 = vmatmul.f32.gmra.mxu1 %v434_v15 }
  0xda   : > { %v658_v57 = vpop.f32.mrf.mxu2 }
  0xdb   : > { %v659_v63 = vadd.f32 %v860_v59, %v658_v57 }
 0x149   : > { %v523_v16 = vpop.f32.mrf.mxu0 }
 0x14a   : > { %v558_v19 = vpop.f32.mrf.mxu1  ;;  %v566_v24 = vrot.slane %v523_v16, 1 }
 0x14f   : > { %v468_v18 = vpop.f32.mrf.mxu3 }
 0x150   : > { %v534_v26 = vrot.slane %v468_v18, 7 }
 0x151   : > { %v526_v21 = vpop.f32.mrf.mxu0 }
 0x152   : > { %v567_v23 = vrot.slane %v526_v21, 1  ;;  %v561_v29 = vpop.f32.mrf.mxu1 }
 0x154   : > { %v570_v28 = vsel %vm568_vm1, %v567_v23, %v566_v24  ;;  %v569_v37 = vsel %vm568_vm1, %v566_v24, %v567_v23 }
 0x155   : > { %v572_v35 = vsel %vm565_vm4, %v570_v28, 0.0 }
 0x157   : > { %v471_v25 = vpop.f32.mrf.mxu3 }
 0x158   : > { %v535_v27 = vrot.slane %v471_v25, 7 }
 0x15a   : > { %v537_v30 = vsel %vm536_vm2, %v534_v26, %v535_v27  ;;  %v538_v31 = vsel %vm536_vm2, %v535_v27, %v534_v26 }
 0x15b   : > { %v539_v32 = vsel %vm532_vm3, %v538_v31, 0.0  ;;  %v562_v33 = vadd.f32 %v561_v29, %v537_v30 }
 0x15c   : > { %v559_v36 = vadd.f32 %v558_v19, %v539_v32 }
 0x15d   : > { %v574_v38 = vadd.f32 %v572_v35, %v562_v33 }
 0x15e   : > { %v573_v40 = vadd.f32 %v569_v37, %v559_v36 }
 0x15f   : > { %v577_v41 = vmul.f32 %v858_v34, %v574_v38 }
 0x160   : > { %v576_v42 = vmul.f32 %v858_v34, %v573_v40 }
 0x161   : > { %v580_v43 = vadd.f32 %v859_v39, %v577_v41 }
 0x162   : > { %v579_v44 = vadd.f32 %v859_v39, %v576_v42 }
 0x163   : > { %v582_v45 = vmul.f32 %v580_v43, %v580_v43 }
 0x164   : > { %v581_v46 = vmul.f32 %v579_v44, %v579_v44 }
 0x165   : > { %v584_v47 = vmul.f32 %v582_v45, %v580_v43 }
 0x166   : > { %v583_v48 = vmul.f32 %v581_v46, %v579_v44 }
 0x167   : > { %v586_v49 = vmul.f32 0.044715, %v584_v47 }
 0x168   : > { %v585_v50 = vmul.f32 0.044715, %v583_v48 }
 0x169   : > { %v588_v52 = vadd.f32 %v586_v49, %v580_v43 }
 0x16a   : > { %v587_v53 = vadd.f32 %v585_v50, %v579_v44 }
 0x16b   : > { %v590_v54 = vmul.f32 0.7978846, %v588_v52 }
 0x16c   : > { %v589_v55 = vmul.f32 0.7978846, %v587_v53 }
 0x16d   : > { %869 = vtanh.f32 %v590_v54 }
 0x16e   : > { %871 = vtanh.f32 %v589_v55 }
 0x173   : > { %v870_v56 = vpop.eup %869 }
 0x174   : > { %v872_v58 = vpop.eup %871  ;;  %v594_v60 = vadd.f32 1.0, %v870_v56 }
 0x175   : > { %v593_v61 = vadd.f32 1.0, %v872_v58 }
 0x176   : > { %v596_v62 = vmul.f32 0.5, %v594_v60 }
 0x177   : > { %v595_v0 = vmul.f32 0.5, %v593_v61 }
 0x178   : > { %v598_v1 = vmul.f32 %v596_v62, %v580_v43 }
 0x179   : > { %v597_v2 = vmul.f32 %v595_v0, %v579_v44 }
 0x17a   : > { %v662_v4 = vadd.f32 %v659_v63, %v598_v1 }
 0x17b   : > { %v661_v5 = vadd.f32 %v656_v3, %v597_v2 }
 0x17c   : > { %664 = vst [vmem:[%s278_s18 + $0x8] sm:$0xff] %v662_v4 }
 0x17d   : > { %663 = vst [vmem:[%s278_s18] sm:$0xff] %v661_v5 }
 0x17e   : > { %960 = shalt.err (!%p957_p8)
}
 0x17f   : > { %s1009_s10 = smov 128   ;;  %s1010_s14 = smov 8  }
 0x180   : > { %798 = dma.vmem_to_hbm [thread:$0]  (%p1084_p5), %s679_s19, 256, %s681_s25, %s666_s20, %s1009_s10, %s1009_s10, %s1010_s14  }
 0x181 PF: > { %p815_p9 = scmp.ge.s32.totalorder %s1003_s24, 2  ;;  %s695_s15 = sand.u32 1, %s991_s21  }
 0x182   : > { %s696_s16 = scalar_lea.sflag [#allocation4], %s695_s15 }
 0x183   : > { %p808_p10 = pnand %p815_p9, %p1088_p6 }
 0x185   : > { %p809_p11 = pneg %p808_p10 }
 0x187   : > { %986 = dma.done.wait (%p809_p11), %s696_s16, 256  }
 0x188   : > { %988 = vsyncadd (%p809_p11), %s696_s16, 4294967040  ;;  %p18_p12 = scmp.ge.s32.totalorder %s1071_s27, 4   ;;  %s1243_s21 = smov %s995_s22 }
 0x189   : > { %s1244_s22 = smov %s999_s23  ;;  %s1245_s23 = smov %s1082_s30 }
 0x18a   : > { %s1246_s24 = smov %s1071_s27  ;;  %20 = sbr.rel (!%p18_p12) target bundleno = 5 (0x5), region = 88 }
 0x18f   :  { %702 = vsyncpa [#allocation3], 1 }
 0x190   :  { %704 = vsyncpa [#allocation3 + $0x1], 1 }
 0x191   :  { %705 = vsyncpa [#allocation6], 1 }
 0x192   :  { %706 = vsyncpa [#allocation4], 1 }
 0x193   :  { %708 = vsyncpa [#allocation4 + $0x1], 1 }

</bundles_post_ra>
